<compile_context>
chip_gen: v5e
topology: v5e:2x2
jax: 0.10.0
libtpu: 0.0.40
codegen_flags: <defaults>
</compile_context>

<pallas_src>
import functools

import jax
import jax.numpy as jnp
from jax.experimental import pallas as pl
from jax.experimental.pallas import tpu as pltpu


# ---------------------------------------------------------------------------
# Fused kernel: two GCN layers + edge scorer, one invocation, everything VMEM.
# ---------------------------------------------------------------------------
def _gcn_fused_kernel(a_ref, x_ref, w12_ref, small_ref, sel_ref, o_ref, *, fp, hp):
    a = a_ref[...]                                             # (Np, Np) bf16
    small = small_ref[...]                                     # (4, Hp) f32
    b1 = small[0:1, :]                                         # (1, Hp)
    b2 = small[1:2, :]                                         # (1, Hp)
    w_edge = small[2:4, :]                                     # (2, Hp) f32: [w_src; w_dst]
    w1 = w12_ref[0:fp, :]                                      # (Fp, Hp) bf16
    w2 = w12_ref[fp:fp + hp, :]                                # (Hp, Hp) bf16

    # ---- Layer 1: relu(A_hat @ (X @ W1) + b1)  (A @ (XW) ordering) ----
    xw1 = jnp.dot(x_ref[...], w1, preferred_element_type=jnp.float32)       # (Np, Hp)
    h1 = jnp.maximum(
        jnp.dot(a, xw1.astype(jnp.bfloat16),
                preferred_element_type=jnp.float32) + b1, 0.0)
    # nn.Dropout(0.5): identity at inference (eval mode).

    # ---- Layer 2: relu(A_hat @ (H1 @ W2) + b2) ----
    hw2 = jnp.dot(h1.astype(jnp.bfloat16), w2,
                  preferred_element_type=jnp.float32)                        # (Np, Hp)
    h2 = jnp.maximum(
        jnp.dot(a, hw2.astype(jnp.bfloat16),
                preferred_element_type=jnp.float32) + b2, 0.0)
    # nn.Dropout(0.5): identity at inference (eval mode).

    # ---- Edge scorer: PROJECT-THEN-GATHER ----
    # Per-node scalar projections, one stacked (2,Hp) x (Np,Hp)^T matmul.
    p = jnp.einsum('kh,nh->kn', w_edge, h2,
                   preferred_element_type=jnp.float32)                       # (2, Np)
    # Gather along edges via pre-transposed one-hot selectors: lane-dense (1, Ep).
    scores = (jnp.dot(p[0:1, :], sel_ref[0],
                      preferred_element_type=jnp.float32)
              + jnp.dot(p[1:2, :], sel_ref[1],
                        preferred_element_type=jnp.float32))                 # (1, Ep)
    o_ref[...] = scores


# ---------------------------------------------------------------------------
# Glue: dense symmetric-normalized adjacency matching PyG gcn_norm
# (add_remaining_self_loops: existing self-loops replaced by weight-1 loops).
# ---------------------------------------------------------------------------
def normalized_adjacency(edge_index, num_nodes):
    src, dst = edge_index[0], edge_index[1]
    w = (src != dst).astype(jnp.float32)                       # drop existing self-loops
    deg = jnp.zeros((num_nodes,), jnp.float32).at[dst].add(w) + 1.0  # +1 added loop
    dinv = jax.lax.rsqrt(deg)
    a = jnp.zeros((num_nodes, num_nodes), jnp.float32)
    a = a.at[dst, src].add(w * dinv[dst] * dinv[src])           # msg j -> i at A[i, j]
    a = a + jnp.diag(dinv * dinv)                               # weight-1 self-loops
    return a


def _round_up(v, m=128):
    return ((v + m - 1) // m) * m


def gcn_forward(params, x, edge_index):
    n, f = x.shape
    e = edge_index.shape[1]
    h = params["w1"].shape[1]
    np_, fp, hp, ep = _round_up(n), _round_up(f), _round_up(h), _round_up(e)

    # Lane-dense zero padding of every dim is exact: padded rows/cols of A,
    # W, b and the selectors are zero, so they never contaminate real outputs.
    a_hat = jnp.pad(normalized_adjacency(edge_index, n),
                    ((0, np_ - n), (0, np_ - n))).astype(jnp.bfloat16)
    # TODO(synk): keep A_hat in f32 if bit-closer parity with the f32 torch model is needed.
    x_p = jnp.pad(x, ((0, np_ - n), (0, fp - f))).astype(jnp.bfloat16)

    # Pack W1|W2 into one bf16 block (fewer DMA descriptors).
    w1p = jnp.pad(params["w1"], ((0, fp - f), (0, hp - h)))
    w2p = jnp.pad(params["w2"], ((0, hp - h), (0, hp - h)))
    w12 = jnp.concatenate([w1p, w2p], axis=0).astype(jnp.bfloat16)   # (Fp+Hp, Hp)

    # Pack b1 / b2 / w_src / w_dst into one (4, Hp) f32 block.
    small = jnp.stack([
        jnp.pad(params["b1"], (0, hp - h)),
        jnp.pad(params["b2"], (0, hp - h)),
        jnp.pad(params["w_lin"][:h, 0], (0, hp - h)),    # torch Linear(2H,1) src half
        jnp.pad(params["w_lin"][h:, 0], (0, hp - h)),    # dst half
    ], axis=0).astype(jnp.float32)                        # (4, Hp)

    # Pre-transposed one-hot selectors, stacked: sel[0] = S_src^T, sel[1] = S_dst^T.
    s_src_t = jax.nn.one_hot(edge_index[0], np_, dtype=jnp.float32, axis=0)  # (Np, E)
    s_dst_t = jax.nn.one_hot(edge_index[1], np_, dtype=jnp.float32, axis=0)
    sel = jnp.stack([jnp.pad(s_src_t, ((0, 0), (0, ep - e))),
                     jnp.pad(s_dst_t, ((0, 0), (0, ep - e)))], axis=0)       # (2, Np, Ep)

    vmem = pl.BlockSpec(memory_space=pltpu.MemorySpace.VMEM)
    out = pl.pallas_call(
        functools.partial(_gcn_fused_kernel, fp=fp, hp=hp),
        out_shape=jax.ShapeDtypeStruct((1, ep), jnp.float32),
        in_specs=[vmem, vmem, vmem, vmem, vmem],
        out_specs=vmem,
    )(a_hat, x_p, w12, small, sel)

    # Final bias added in the surrounding XLA graph (free); trim edge padding.
    return out[0, :e] + params["b_lin"][0]        # (E,) — matches torch .squeeze()


# ---------------------------------------------------------------------------
# Pure-JAX reference (f32) for a correctness sanity check.
# ---------------------------------------------------------------------------
def gcn_reference(params, x, edge_index):
    n = x.shape[0]
    a = normalized_adjacency(edge_index, n)
    h1 = jnp.maximum(a @ (x @ params["w1"]) + params["b1"], 0.0)
    h2 = jnp.maximum(a @ (h1 @ params["w2"]) + params["b2"], 0.0)
    feat = jnp.concatenate([h2[edge_index[0]], h2[edge_index[1]]], axis=1)
    return (feat @ params["w_lin"] + params["b_lin"])[:, 0]


if __name__ == "__main__":
    N, HID, E = 64, 32, 128  # num_nodes (= conv1 in_features), hidden, num_edges
    key = jax.random.PRNGKey(0)
    k1, k2, k3, k4, k5, k6, k7 = jax.random.split(key, 7)

    # One-hot node-id features: conv1 input dim == number of nodes.
    x = jnp.eye(N, dtype=jnp.float32)
    edge_index = jax.random.randint(k1, (2, E), 0, N, dtype=jnp.int32)

    params = {
        "w1": jax.random.normal(k2, (N, HID), jnp.float32) * 0.1,
        "b1": jax.random.normal(k5, (HID,), jnp.float32) * 0.1,
        "w2": jax.random.normal(k3, (HID, HID), jnp.float32) * 0.1,
        "b2": jax.random.normal(k6, (HID,), jnp.float32) * 0.1,
        # torch Linear(2H, 1) weight is (1, 2H); stored transposed here.
        "w_lin": jax.random.normal(k4, (2 * HID, 1), jnp.float32) * 0.1,
        "b_lin": jax.random.normal(k7, (1,), jnp.float32) * 0.1,
    }

    out = jax.jit(gcn_forward)(params, x, edge_index)
    jax.block_until_ready(out)
    assert out.shape == (E,) and out.dtype == jnp.float32

    ref = gcn_reference(params, x, edge_index)
    max_err = float(jnp.max(jnp.abs(out - ref)))
    assert jnp.allclose(out, ref, rtol=5e-2, atol=3e-3), f"max abs err {max_err}"
    print("KERNEL_OK")
</pallas_src>

<mosaic_0001>
module attributes {stable_mosaic.version = 11 : i64} {
  func.func @_gcn_fused_kernel(%arg0: memref<128x128xbf16, #tpu.memory_space<vmem>>, %arg1: memref<128x128xbf16, #tpu.memory_space<vmem>>, %arg2: memref<256x128xbf16, #tpu.memory_space<vmem>>, %arg3: memref<4x128xf32, #tpu.memory_space<vmem>>, %arg4: memref<2x128x128xf32, #tpu.memory_space<vmem>>, %arg5: memref<1x128xf32, #tpu.memory_space<vmem>>) attributes {dimension_semantics = [], scalar_prefetch = 0 : i64, scratch_operands = 0 : i64, tpu.core_type = #tpu.core_type<tc>} {
    %c0 = arith.constant 0 : index
    %c0_0 = arith.constant 0 : index
    %0 = vector.load %arg0[%c0, %c0_0] : memref<128x128xbf16, #tpu.memory_space<vmem>>, vector<128x128xbf16>
    %c0_1 = arith.constant 0 : index
    %c0_2 = arith.constant 0 : index
    %1 = vector.load %arg3[%c0_1, %c0_2] : memref<4x128xf32, #tpu.memory_space<vmem>>, vector<4x128xf32>
    %2 = vector.extract_strided_slice %1 {offsets = [0, 0], sizes = [1, 128], strides = [1, 1]} : vector<4x128xf32> to vector<1x128xf32>
    %3 = vector.extract_strided_slice %1 {offsets = [1, 0], sizes = [1, 128], strides = [1, 1]} : vector<4x128xf32> to vector<1x128xf32>
    %4 = vector.extract_strided_slice %1 {offsets = [2, 0], sizes = [2, 128], strides = [1, 1]} : vector<4x128xf32> to vector<2x128xf32>
    %c0_3 = arith.constant 0 : index
    %c0_4 = arith.constant 0 : index
    %5 = vector.load %arg2[%c0_3, %c0_4] : memref<256x128xbf16, #tpu.memory_space<vmem>>, vector<128x128xbf16>
    %c128 = arith.constant 128 : index
    %c0_5 = arith.constant 0 : index
    %6 = vector.load %arg2[%c128, %c0_5] : memref<256x128xbf16, #tpu.memory_space<vmem>>, vector<128x128xbf16>
    %c0_6 = arith.constant 0 : index
    %c0_7 = arith.constant 0 : index
    %7 = vector.load %arg1[%c0_6, %c0_7] : memref<128x128xbf16, #tpu.memory_space<vmem>>, vector<128x128xbf16>
    %cst = arith.constant dense<0.000000e+00> : vector<128x128xf32>
    %8 = tpu.matmul %7, %5, %cst {dimension_numbers = #tpu.dot_dimension_numbers<[1], [0], [0], [1], [0, 0, 1, 1], [], []>} : vector<128x128xbf16>, vector<128x128xbf16>, vector<128x128xf32> -> vector<128x128xf32>
    %9 = arith.truncf %8 : vector<128x128xf32> to vector<128x128xbf16>
    %cst_8 = arith.constant dense<0.000000e+00> : vector<128x128xf32>
    %10 = tpu.matmul %0, %9, %cst_8 {dimension_numbers = #tpu.dot_dimension_numbers<[1], [0], [0], [1], [0, 0, 1, 1], [], []>} : vector<128x128xbf16>, vector<128x128xbf16>, vector<128x128xf32> -> vector<128x128xf32>
    %11 = vector.broadcast %2 : vector<1x128xf32> to vector<128x128xf32>
    %12 = arith.addf %10, %11 : vector<128x128xf32>
    %cst_9 = arith.constant 0.000000e+00 : f32
    %13 = vector.broadcast %cst_9 : f32 to vector<128x128xf32>
    %14 = arith.maximumf %12, %13 : vector<128x128xf32>
    %15 = arith.truncf %14 : vector<128x128xf32> to vector<128x128xbf16>
    %cst_10 = arith.constant dense<0.000000e+00> : vector<128x128xf32>
    %16 = tpu.matmul %15, %6, %cst_10 {dimension_numbers = #tpu.dot_dimension_numbers<[1], [0], [0], [1], [0, 0, 1, 1], [], []>} : vector<128x128xbf16>, vector<128x128xbf16>, vector<128x128xf32> -> vector<128x128xf32>
    %17 = arith.truncf %16 : vector<128x128xf32> to vector<128x128xbf16>
    %cst_11 = arith.constant dense<0.000000e+00> : vector<128x128xf32>
    %18 = tpu.matmul %0, %17, %cst_11 {dimension_numbers = #tpu.dot_dimension_numbers<[1], [0], [0], [1], [0, 0, 1, 1], [], []>} : vector<128x128xbf16>, vector<128x128xbf16>, vector<128x128xf32> -> vector<128x128xf32>
    %19 = vector.broadcast %3 : vector<1x128xf32> to vector<128x128xf32>
    %20 = arith.addf %18, %19 : vector<128x128xf32>
    %cst_12 = arith.constant 0.000000e+00 : f32
    %21 = vector.broadcast %cst_12 : f32 to vector<128x128xf32>
    %22 = arith.maximumf %20, %21 : vector<128x128xf32>
    "tpu.trace_start"() <{level = 10 : i32, message = "kh,nh->kn"}> : () -> ()
    %cst_13 = arith.constant dense<0.000000e+00> : vector<2x128xf32>
    %23 = tpu.matmul %4, %22, %cst_13 {dimension_numbers = #tpu.dot_dimension_numbers<[1], [1], [0], [0], [0, 0, 1, 0], [], []>} : vector<2x128xf32>, vector<128x128xf32>, vector<2x128xf32> -> vector<2x128xf32>
    "tpu.trace_stop"() : () -> ()
    %24 = vector.extract_strided_slice %23 {offsets = [0, 0], sizes = [1, 128], strides = [1, 1]} : vector<2x128xf32> to vector<1x128xf32>
    %c0_14 = arith.constant 0 : index
    %c0_15 = arith.constant 0 : index
    %c0_16 = arith.constant 0 : index
    %25 = vector.load %arg4[%c0_14, %c0_15, %c0_16] : memref<2x128x128xf32, #tpu.memory_space<vmem>>, vector<1x128x128xf32>
    %26 = vector.shape_cast %25 : vector<1x128x128xf32> to vector<128x128xf32>
    %cst_17 = arith.constant dense<0.000000e+00> : vector<1x128xf32>
    %27 = tpu.matmul %24, %26, %cst_17 {dimension_numbers = #tpu.dot_dimension_numbers<[1], [0], [0], [1], [0, 0, 1, 1], [], []>} : vector<1x128xf32>, vector<128x128xf32>, vector<1x128xf32> -> vector<1x128xf32>
    %28 = vector.extract_strided_slice %23 {offsets = [1, 0], sizes = [1, 128], strides = [1, 1]} : vector<2x128xf32> to vector<1x128xf32>
    %c1 = arith.constant 1 : index
    %c0_18 = arith.constant 0 : index
    %c0_19 = arith.constant 0 : index
    %29 = vector.load %arg4[%c1, %c0_18, %c0_19] : memref<2x128x128xf32, #tpu.memory_space<vmem>>, vector<1x128x128xf32>
    %30 = vector.shape_cast %29 : vector<1x128x128xf32> to vector<128x128xf32>
    %cst_20 = arith.constant dense<0.000000e+00> : vector<1x128xf32>
    %31 = tpu.matmul %28, %30, %cst_20 {dimension_numbers = #tpu.dot_dimension_numbers<[1], [0], [0], [1], [0, 0, 1, 1], [], []>} : vector<1x128xf32>, vector<128x128xf32>, vector<1x128xf32> -> vector<1x128xf32>
    %32 = arith.addf %27, %31 : vector<1x128xf32>
    %c0_21 = arith.constant 0 : index
    %c0_22 = arith.constant 0 : index
    %33 = vector.load %arg5[%c0_21, %c0_22] : memref<1x128xf32, #tpu.memory_space<vmem>>, vector<1x128xf32>
    tpu.vector_store %arg5[%c0_21, %c0_22], %32 {strides = array<i32>} : memref<1x128xf32, #tpu.memory_space<vmem>>, vector<1x128xf32>,
    return
  }
}

</mosaic_0001>

<bundles_post_ra>
// kernel: gcn_forward.1
= control target key start
LH: loop header
LB: loop body
LE: loop exit
PB: predicated region body
PF: predicated region fallthrough
CT: control target
= control target key end

     0   :  { %s1106_s2 = inlined_call_operand.vmem [shape: bf16[256,128], index: 2, kind: input, shape index: {}]   ;;  %s1107_s1 = inlined_call_operand.vmem [shape: bf16[128,128], index: 1, kind: input, shape index: {}]   ;;  %s1108_s0 = inlined_call_operand.vmem [shape: bf16[128,128], index: 0, kind: input, shape index: {}]   ;;  %s1109_s3 = inlined_call_operand.vmem [shape: f32[4,128], index: 3, kind: input, shape index: {}]   ;;  %s1110_s4 = inlined_call_operand.vmem [shape: f32[2,128,128], index: 4, kind: input, shape index: {}]   ;;  %s1111_s5 = inlined_call_operand.vmem [shape: f32[1,128], index: 5, kind: output, shape index: {}]  }
   0x1   :  { %v794_v0 = vld [vmem:[%s1106_s2 + $0x38] sm:$0xff]  ;;  %v793_v1 = vld [vmem:[%s1106_s2 + $0x30] sm:$0xff]  ;;  %v792_v2 = vld [vmem:[%s1106_s2 + $0x28] sm:$0xff] }
   0x2   :  { %181 = vmatpush.bf16.msra.mxu0 %v794_v0  ;;  %v791_v3 = vld [vmem:[%s1106_s2 + $0x20] sm:$0xff]  ;;  %v790_v4 = vld [vmem:[%s1106_s2 + $0x18] sm:$0xff]  ;;  %v789_v5 = vld [vmem:[%s1106_s2 + $0x10] sm:$0xff] }
   0x3   :  { %v788_v6 = vld [vmem:[%s1106_s2 + $0x8] sm:$0xff]  ;;  %v787_v7 = vld [vmem:[%s1106_s2] sm:$0xff]  ;;  %v805_v10 = vld [vmem:[%s1107_s1 + $0x10] sm:$0xff] }
   0x4   :  { %v803_v8 = vld [vmem:[%s1107_s1] sm:$0xff]  ;;  %v804_v9 = vld [vmem:[%s1107_s1 + $0x8] sm:$0xff]  ;;  %v806_v11 = vld [vmem:[%s1107_s1 + $0x18] sm:$0xff] }
   0x5   :  { %v807_v12 = vld [vmem:[%s1107_s1 + $0x20] sm:$0xff]  ;;  %v808_v13 = vld [vmem:[%s1107_s1 + $0x28] sm:$0xff]  ;;  %v809_v14 = vld [vmem:[%s1107_s1 + $0x30] sm:$0xff] }
   0x6   :  { %182 = vmatpush.bf16.msra.mxu0 %v793_v1  ;;  %v810_v15 = vld [vmem:[%s1107_s1 + $0x38] sm:$0xff]  ;;  %v892_v40 = vld [vmem:[%s1108_s0] sm:$0xff]  ;;  %v898_v41 = vld [vmem:[%s1108_s0 + $0x8] sm:$0xff] }
   0x7   :  { %v904_v42 = vld [vmem:[%s1108_s0 + $0x10] sm:$0xff]  ;;  %v910_v43 = vld [vmem:[%s1108_s0 + $0x18] sm:$0xff]  ;;  %v916_v44 = vld [vmem:[%s1108_s0 + $0x20] sm:$0xff] }
   0x8   :  { %v802_v45 = vld [vmem:[%s1106_s2 + $0x78] sm:$0xff]  ;;  %v925_v46 = vld [vmem:[%s1108_s0 + $0x28] sm:$0xff]  ;;  %v801_v47 = vld [vmem:[%s1106_s2 + $0x70] sm:$0xff] }
   0x9   :  { %408 = vmatpush.bf16.msra.mxu2 %v802_v45  ;;  %v800_v48 = vld [vmem:[%s1106_s2 + $0x68] sm:$0xff]  ;;  %v799_v49 = vld [vmem:[%s1106_s2 + $0x60] sm:$0xff]  ;;  %v798_v50 = vld [vmem:[%s1106_s2 + $0x58] sm:$0xff] }
   0xa   :  { %183 = vmatpush.bf16.msra.mxu0 %v792_v2  ;;  %v943_v51 = vld [vmem:[%s1108_s0 + $0x30] sm:$0xff]  ;;  %v796_v53 = vld [vmem:[%s1106_s2 + $0x48] sm:$0xff]  ;;  %v795_v54 = vld [vmem:[%s1106_s2 + $0x40] sm:$0xff] }
   0xb   :  { %v797_v52 = vld [vmem:[%s1106_s2 + $0x50] sm:$0xff]  ;;  %v958_v55 = vld [vmem:[%s1108_s0 + $0x38] sm:$0xff]  ;;  %v964_v56 = vld [vmem:[%s1109_s3] sm:$0xf] }
   0xc   :  { %v238_v58 = vperm.slane %v964_v56, 0 }
   0xd   :  { %409 = vmatpush.bf16.msra.mxu2 %v801_v47 }
   0xe   :  { %184 = vmatpush.bf16.msra.mxu0 %v791_v3 }
  0x11   :  { %410 = vmatpush.bf16.msra.mxu2 %v800_v48 }
  0x12   :  { %185 = vmatpush.bf16.msra.mxu0 %v790_v4 }
  0x15   :  { %411 = vmatpush.bf16.msra.mxu2 %v799_v49 }
  0x16   :  { %186 = vmatpush.bf16.msra.mxu0 %v789_v5 }
  0x19   :  { %412 = vmatpush.bf16.msra.mxu2 %v798_v50 }
  0x1a   :  { %187 = vmatpush.bf16.msra.mxu0 %v788_v6 }
  0x1d   :  { %413 = vmatpush.bf16.msra.mxu2 %v797_v52 }
  0x1e   :  { %188 = vmatpush.bf16.msra.mxu0 %v787_v7 }
  0x21   :  { %189 = vmatmul.bf16.vlgmr.msra.gmra.mxu0 %v803_v8  ;;  %414 = vmatpush.bf16.msra.mxu2 %v796_v53 }
  0x25   :  { %415 = vmatpush.bf16.msra.mxu2 %v795_v54 }
  0x31   :  { %194 = vmatmul.bf16.gmra.mxu0 %v804_v9 }
  0x41   :  { %199 = vmatmul.bf16.gmra.mxu0 %v805_v10 }
  0x51   :  { %204 = vmatmul.bf16.gmra.mxu0 %v806_v11 }
  0x61   :  { %209 = vmatmul.bf16.gmra.mxu0 %v807_v12 }
  0x71   :  { %214 = vmatmul.bf16.gmra.mxu0 %v808_v13 }
  0x81   :  { %219 = vmatmul.bf16.gmra.mxu0 %v809_v14 }
  0x91   :  { %224 = vmatmul.bf16.gmra.mxu0 %v810_v15 }
  0x9e   :  { %v190_v16 = vpop.f32.mrf.mxu0 }
  0xa6   :  { %v192_v17 = vpop.f32.mrf.mxu0 }
  0xa7   :  { %v230_v18 = vpack.c.bf16 %v192_v17, %v190_v16 }
  0xae   :  { %v195_v19 = vpop.f32.mrf.mxu0 }
  0xb6   :  { %v197_v20 = vpop.f32.mrf.mxu0 }
  0xb7   :  { %v231_v21 = vpack.c.bf16 %v197_v20, %v195_v19 }
  0xbe   :  { %v200_v22 = vpop.f32.mrf.mxu0 }
  0xc6   :  { %v202_v23 = vpop.f32.mrf.mxu0 }
  0xc7   :  { %v232_v24 = vpack.c.bf16 %v202_v23, %v200_v22 }
  0xce   :  { %v205_v25 = vpop.f32.mrf.mxu0 }
  0xd6   :  { %v207_v26 = vpop.f32.mrf.mxu0 }
  0xd7   :  { %v233_v27 = vpack.c.bf16 %v207_v26, %v205_v25 }
  0xde   :  { %v210_v28 = vpop.f32.mrf.mxu0 }
  0xe6   :  { %v212_v29 = vpop.f32.mrf.mxu0 }
  0xe7   :  { %v234_v39 = vpack.c.bf16 %v212_v29, %v210_v28 }
  0xee   :  { %v215_v30 = vpop.f32.mrf.mxu0 }
  0xf6   :  { %v217_v31 = vpop.f32.mrf.mxu0 }
  0xf7   :  { %v235_v38 = vpack.c.bf16 %v217_v31, %v215_v30 }
  0xfe   :  { %v220_v32 = vpop.f32.mrf.mxu0 }
 0x106   :  { %v222_v33 = vpop.f32.mrf.mxu0 }
 0x107   :  { %v236_v37 = vpack.c.bf16 %v222_v33, %v220_v32 }
 0x10e   :  { %v225_v34 = vpop.f32.mrf.mxu0 }
 0x116   :  { %v227_v35 = vpop.f32.mrf.mxu0 }
 0x117   :  { %v237_v36 = vpack.c.bf16 %v227_v35, %v225_v34 }
 0x119   :  { %287 = vmatpush.bf16.msra.mxu1 %v237_v36 }
 0x11d   :  { %288 = vmatpush.bf16.msra.mxu1 %v236_v37 }
 0x121   :  { %289 = vmatpush.bf16.msra.mxu1 %v235_v38 }
 0x125   :  { %290 = vmatpush.bf16.msra.mxu1 %v234_v39 }
 0x129   :  { %291 = vmatpush.bf16.msra.mxu1 %v233_v27 }
 0x12d   :  { %292 = vmatpush.bf16.msra.mxu1 %v232_v24 }
 0x131   :  { %293 = vmatpush.bf16.msra.mxu1 %v231_v21 }
 0x135   :  { %294 = vmatpush.bf16.msra.mxu1 %v230_v18 }
 0x138   :  { %295 = vmatmul.bf16.vlgmr.msra.gmra.mxu1 %v892_v40 }
 0x148   :  { %300 = vmatmul.bf16.gmra.mxu1 %v898_v41 }
 0x158   :  { %305 = vmatmul.bf16.gmra.mxu1 %v904_v42 }
 0x168   :  { %310 = vmatmul.bf16.gmra.mxu1 %v910_v43 }
 0x178   :  { %315 = vmatmul.bf16.gmra.mxu1 %v916_v44 }
 0x188   :  { %320 = vmatmul.bf16.gmra.mxu1 %v925_v46 }
 0x198   :  { %325 = vmatmul.bf16.gmra.mxu1 %v943_v51 }
 0x1a8   :  { %330 = vmatmul.bf16.gmra.mxu1 %v958_v55 }
 0x1b5   :  { %v296_v57 = vpop.f32.mrf.mxu1 }
 0x1b6   :  { %v297_v59 = vadd.f32 %v296_v57, %v238_v58 }
 0x1b8   :  { %v336_v62 = vmax.f32 %v297_v59, 0.0 }
 0x1bd   :  { %v298_v60 = vpop.f32.mrf.mxu1 }
 0x1be   :  { %v299_v61 = vadd.f32 %v298_v60, %v238_v58 }
 0x1c0   :  { %v337_v63 = vmax.f32 %v299_v61, 0.0 }
 0x1c2   :  { %v352_v0 = vpack.c.bf16 %v337_v63, %v336_v62 }
 0x1c4   :  { %416 = vmatmul.bf16.vlgmr.msra.gmra.mxu2 %v352_v0 }
 0x1c5   :  { %v301_v1 = vpop.f32.mrf.mxu1 }
 0x1c6   :  { %v302_v2 = vadd.f32 %v301_v1, %v238_v58 }
 0x1c8   :  { %v338_v5 = vmax.f32 %v302_v2, 0.0 }
 0x1cd   :  { %v303_v3 = vpop.f32.mrf.mxu1 }
 0x1ce   :  { %v304_v4 = vadd.f32 %v303_v3, %v238_v58 }
 0x1d0   :  { %v339_v6 = vmax.f32 %v304_v4, 0.0 }
 0x1d2   :  { %v353_v7 = vpack.c.bf16 %v339_v6, %v338_v5 }
 0x1d4   :  { %421 = vmatmul.bf16.gmra.mxu2 %v353_v7 }
 0x1d5   :  { %v306_v8 = vpop.f32.mrf.mxu1 }
 0x1d6   :  { %v307_v9 = vadd.f32 %v306_v8, %v238_v58 }
 0x1d8   :  { %v340_v12 = vmax.f32 %v307_v9, 0.0 }
 0x1dd   :  { %v308_v10 = vpop.f32.mrf.mxu1 }
 0x1de   :  { %v309_v11 = vadd.f32 %v308_v10, %v238_v58 }
 0x1e0   :  { %v341_v13 = vmax.f32 %v309_v11, 0.0 }
 0x1e2   :  { %v354_v14 = vpack.c.bf16 %v341_v13, %v340_v12 }
 0x1e4   :  { %426 = vmatmul.bf16.gmra.mxu2 %v354_v14 }
 0x1e5   :  { %v311_v15 = vpop.f32.mrf.mxu1 }
 0x1e6   :  { %v312_v16 = vadd.f32 %v311_v15, %v238_v58 }
 0x1e8   :  { %v342_v19 = vmax.f32 %v312_v16, 0.0 }
 0x1ed   :  { %v313_v17 = vpop.f32.mrf.mxu1 }
 0x1ee   :  { %v314_v18 = vadd.f32 %v313_v17, %v238_v58 }
 0x1f0   :  { %v343_v20 = vmax.f32 %v314_v18, 0.0 }
 0x1f2   :  { %v355_v21 = vpack.c.bf16 %v343_v20, %v342_v19 }
 0x1f4   :  { %431 = vmatmul.bf16.gmra.mxu2 %v355_v21 }
 0x1f5   :  { %v316_v22 = vpop.f32.mrf.mxu1 }
 0x1f6   :  { %v317_v23 = vadd.f32 %v316_v22, %v238_v58 }
 0x1f8   :  { %v344_v26 = vmax.f32 %v317_v23, 0.0 }
 0x1fd   :  { %v318_v24 = vpop.f32.mrf.mxu1 }
 0x1fe   :  { %v319_v25 = vadd.f32 %v318_v24, %v238_v58 }
 0x200   :  { %v345_v27 = vmax.f32 %v319_v25, 0.0 }
 0x202   :  { %v356_v28 = vpack.c.bf16 %v345_v27, %v344_v26 }
 0x204   :  { %436 = vmatmul.bf16.gmra.mxu2 %v356_v28 }
 0x205   :  { %v321_v29 = vpop.f32.mrf.mxu1 }
 0x206   :  { %v322_v30 = vadd.f32 %v321_v29, %v238_v58 }
 0x208   :  { %v346_v33 = vmax.f32 %v322_v30, 0.0 }
 0x20d   :  { %v323_v31 = vpop.f32.mrf.mxu1 }
 0x20e   :  { %v324_v32 = vadd.f32 %v323_v31, %v238_v58 }
 0x210   :  { %v347_v34 = vmax.f32 %v324_v32, 0.0 }
 0x212   :  { %v357_v35 = vpack.c.bf16 %v347_v34, %v346_v33 }
 0x214   :  { %441 = vmatmul.bf16.gmra.mxu2 %v357_v35 }
 0x215   :  { %v326_v36 = vpop.f32.mrf.mxu1 }
 0x216   :  { %v327_v37 = vadd.f32 %v326_v36, %v238_v58 }
 0x218   :  { %v348_v45 = vmax.f32 %v327_v37, 0.0 }
 0x21d   :  { %v328_v38 = vpop.f32.mrf.mxu1 }
 0x21e   :  { %v329_v39 = vadd.f32 %v328_v38, %v238_v58 }
 0x220   :  { %v349_v47 = vmax.f32 %v329_v39, 0.0 }
 0x222   :  { %v358_v48 = vpack.c.bf16 %v349_v47, %v348_v45 }
 0x224   :  { %446 = vmatmul.bf16.gmra.mxu2 %v358_v48 }
 0x225   :  { %v331_v49 = vpop.f32.mrf.mxu1 }
 0x226   :  { %v332_v50 = vadd.f32 %v331_v49, %v238_v58 }
 0x228   :  { %v350_v54 = vmax.f32 %v332_v50, 0.0 }
 0x22d   :  { %v333_v52 = vpop.f32.mrf.mxu1 }
 0x22e   :  { %v334_v53 = vadd.f32 %v333_v52, %v238_v58 }
 0x230   :  { %v351_v57 = vmax.f32 %v334_v53, 0.0 }
 0x232   :  { %v359_v59 = vpack.c.bf16 %v351_v57, %v350_v54  ;;  %v569_v54 = vld [vmem:[%s1110_s4 + $0x78] sm:$0xff] }
 0x233   :  { %v778_v57 = vld [vmem:[%s1110_s4 + $0xf8] sm:$0xff]  ;;  %610 = vmatpush.msrb.mxu2 %v569_v54 }
 0x234   :  { %451 = vmatmul.bf16.gmra.mxu2 %v359_v59  ;;  %v568_v59 = vld [vmem:[%s1110_s4 + $0x70] sm:$0xff]  ;;  %590 = vmatpush.msrb.mxu1 %v778_v57 }
 0x235   :  { %611 = vmatpush.msrb.mxu2 %v568_v59 }
 0x247   :  { %v417_v60 = vpop.f32.mrf.mxu2 }
 0x24f   :  { %v419_v61 = vpop.f32.mrf.mxu2 }
 0x250   :  { %v457_v62 = vpack.c.bf16 %v419_v61, %v417_v60  ;;  %v777_v60 = vld [vmem:[%s1110_s4 + $0xf0] sm:$0xff]  ;;  %v567_v61 = vld [vmem:[%s1110_s4 + $0x68] sm:$0xff] }
 0x251   :  { %591 = vmatpush.msrb.mxu1 %v777_v60  ;;  %612 = vmatpush.msrb.mxu2 %v567_v61 }
 0x257   :  { %v422_v63 = vpop.f32.mrf.mxu2 }
 0x25f   :  { %v424_v0 = vpop.f32.mrf.mxu2 }
 0x260   :  { %v458_v1 = vpack.c.bf16 %v424_v0, %v422_v63  ;;  %v776_v0 = vld [vmem:[%s1110_s4 + $0xe8] sm:$0xff] }
 0x261   :  { %592 = vmatpush.msrb.mxu1 %v776_v0 }
 0x267   :  { %v427_v2 = vpop.f32.mrf.mxu2 }
 0x26f   :  { %v429_v3 = vpop.f32.mrf.mxu2 }
 0x270   :  { %v459_v4 = vpack.c.bf16 %v429_v3, %v427_v2  ;;  %v775_v2 = vld [vmem:[%s1110_s4 + $0xe0] sm:$0xff]  ;;  %v565_v3 = vld [vmem:[%s1110_s4 + $0x58] sm:$0xff] }
 0x271   :  { %593 = vmatpush.msrb.mxu1 %v775_v2 }
 0x277   :  { %v432_v5 = vpop.f32.mrf.mxu2 }
 0x27f   :  { %v434_v6 = vpop.f32.mrf.mxu2 }
 0x280   :  { %v460_v7 = vpack.c.bf16 %v434_v6, %v432_v5  ;;  %v774_v6 = vld [vmem:[%s1110_s4 + $0xd8] sm:$0xff] }
 0x281   :  { %594 = vmatpush.msrb.mxu1 %v774_v6 }
 0x287   :  { %v437_v8 = vpop.f32.mrf.mxu2 }
 0x28f   :  { %v439_v9 = vpop.f32.mrf.mxu2 }
 0x290   :  { %v461_v18 = vpack.c.bf16 %v439_v9, %v437_v8  ;;  %v773_v8 = vld [vmem:[%s1110_s4 + $0xd0] sm:$0xff]  ;;  %v563_v9 = vld [vmem:[%s1110_s4 + $0x48] sm:$0xff] }
 0x291   :  { %595 = vmatpush.msrb.mxu1 %v773_v8 }
 0x297   :  { %v442_v10 = vpop.f32.mrf.mxu2 }
 0x29f   :  { %v444_v58 = vpop.f32.mrf.mxu2 }
 0x2a0   :  { %v462_v17 = vpack.c.bf16 %v444_v58, %v442_v10 }
 0x2a7   :  { %v447_v11 = vpop.f32.mrf.mxu2 }
 0x2af   :  { %v449_v12 = vpop.f32.mrf.mxu2 }
 0x2b0   :  { %v463_v16 = vpack.c.bf16 %v449_v12, %v447_v11  ;;  %v772_v11 = vld [vmem:[%s1110_s4 + $0xc8] sm:$0xff]  ;;  %v562_v12 = vld [vmem:[%s1110_s4 + $0x40] sm:$0xff] }
 0x2b1   :  { %596 = vmatpush.msrb.mxu1 %v772_v11 }
 0x2b7   :  { %v452_v13 = vpop.f32.mrf.mxu2 }
 0x2bf   :  { %v454_v14 = vpop.f32.mrf.mxu2 }
 0x2c0   :  { %v464_v15 = vpack.c.bf16 %v454_v14, %v452_v13  ;;  %v771_v13 = vld [vmem:[%s1110_s4 + $0xc0] sm:$0xff]  ;;  %v561_v14 = vld [vmem:[%s1110_s4 + $0x38] sm:$0xff] }
 0x2c1   :  { %597 = vmatpush.msrb.mxu1 %v771_v13 }
 0x2c2   :  { %466 = vmatpush.bf16.msra.mxu3 %v464_v15 }
 0x2c6   :  { %467 = vmatpush.bf16.msra.mxu3 %v463_v16 }
 0x2ca   :  { %468 = vmatpush.bf16.msra.mxu3 %v462_v17  ;;  %v770_v17 = vld [vmem:[%s1110_s4 + $0xb8] sm:$0xff] }
 0x2cb   :  { %598 = vmatpush.msrb.mxu1 %v770_v17 }
 0x2ce   :  { %469 = vmatpush.bf16.msra.mxu3 %v461_v18  ;;  %v560_v18 = vld [vmem:[%s1110_s4 + $0x30] sm:$0xff] }
 0x2d2   :  { %470 = vmatpush.bf16.msra.mxu3 %v460_v7  ;;  %v564_v7 = vld [vmem:[%s1110_s4 + $0x50] sm:$0xff] }
 0x2d6   :  { %471 = vmatpush.bf16.msra.mxu3 %v459_v4 }
 0x2da   :  { %472 = vmatpush.bf16.msra.mxu3 %v458_v1  ;;  %v566_v1 = vld [vmem:[%s1110_s4 + $0x60] sm:$0xff] }
 0x2db   :  { %613 = vmatpush.msrb.mxu2 %v566_v1 }
 0x2dd   :  { %614 = vmatpush.msrb.mxu2 %v565_v3 }
 0x2de   :  { %473 = vmatpush.bf16.msra.mxu3 %v457_v62 }
 0x2df   :  { %615 = vmatpush.msrb.mxu2 %v564_v7 }
 0x2e1   :  { %474 = vmatmul.bf16.vlgmr.msra.gmra.mxu3 %v892_v40  ;;  %616 = vmatpush.msrb.mxu2 %v563_v9 }
 0x2e3   :  { %617 = vmatpush.msrb.mxu2 %v562_v12 }
 0x2e5   :  { %618 = vmatpush.msrb.mxu2 %v561_v14 }
 0x2e7   :  { %619 = vmatpush.msrb.mxu2 %v560_v18 }
 0x2f1   :  { %479 = vmatmul.bf16.gmra.mxu3 %v898_v41 }
 0x301   :  { %484 = vmatmul.bf16.gmra.mxu3 %v904_v42 }
 0x311   :  { %489 = vmatmul.bf16.gmra.mxu3 %v910_v43 }
 0x321   :  { %494 = vmatmul.bf16.gmra.mxu3 %v916_v44 }
 0x331   :  { %499 = vmatmul.bf16.gmra.mxu3 %v925_v46 }
 0x341   :  { %504 = vmatmul.bf16.gmra.mxu3 %v943_v51 }
 0x351   :  { %509 = vmatmul.bf16.gmra.mxu3 %v958_v55  ;;  %v984_v55 = vperm.slane %v964_v56, 1 }
 0x364   :  { %v975_v19 = vpop.f32.mrf.mxu3 }
 0x36c   :  { %v977_v20 = vpop.f32.mrf.mxu3 }
 0x374   :  { %v979_v21 = vpop.f32.mrf.mxu3 }
 0x375   :  { %v481_v15 = vadd.f32 %v979_v21, %v984_v55  ;;  %v559_v21 = vld [vmem:[%s1110_s4 + $0x28] sm:$0xff] }
 0x376   :  { %620 = vmatpush.msrb.mxu2 %v559_v21 }
 0x37c   :  { %v981_v40 = vpop.f32.mrf.mxu3 }
 0x37d   :  { %v483_v10 = vadd.f32 %v981_v40, %v984_v55  ;;  %v769_v40 = vld [vmem:[%s1110_s4 + $0xb0] sm:$0xff] }
 0x37e   :  { %599 = vmatpush.msrb.mxu1 %v769_v40 }
 0x37f   :  { %v518_v16 = vmax.f32 %v483_v10, 0.0 }
 0x384   :  { %v485_v41 = vpop.f32.mrf.mxu3 }
 0x385   :  { %v486_v4 = vadd.f32 %v485_v41, %v984_v55  ;;  %v478_v41 = vadd.f32 %v977_v20, %v984_v55  ;;  %v557_v20 = vld [vmem:[%s1110_s4 + $0x18] sm:$0xff] }
 0x387   :  { %v519_v58 = vmax.f32 %v486_v4, 0.0 }
 0x38c   :  { %v487_v42 = vpop.f32.mrf.mxu3 }
 0x38d   :  { %v488_v62 = vadd.f32 %v487_v42, %v984_v55  ;;  %v517_v42 = vmax.f32 %v481_v15, 0.0 }
 0x38f   :  { %v520_v5 = vmax.f32 %v488_v62, 0.0 }
 0x394   :  { %v490_v22 = vpop.f32.mrf.mxu3 }
 0x395   :  { %v491_v52 = vadd.f32 %v490_v22, %v984_v55  ;;  %v768_v22 = vld [vmem:[%s1110_s4 + $0xa8] sm:$0xff] }
 0x396   :  { %600 = vmatpush.msrb.mxu1 %v768_v22 }
 0x397   :  { %v521_v63 = vmax.f32 %v491_v52, 0.0 }
 0x39c   :  { %v492_v43 = vpop.f32.mrf.mxu3 }
 0x39d   :  { %v493_v49 = vadd.f32 %v492_v43, %v984_v55  ;;  %v558_v43 = vld [vmem:[%s1110_s4 + $0x20] sm:$0xff] }
 0x39e   :  { %621 = vmatpush.msrb.mxu2 %v558_v43 }
 0x39f   :  { %v522_v53 = vmax.f32 %v493_v49, 0.0 }
 0x3a0   :  { %622 = vmatpush.msrb.mxu2 %v557_v20 }
 0x3a4   :  { %v495_v23 = vpop.f32.mrf.mxu3 }
 0x3a5   :  { %v496_v47 = vadd.f32 %v495_v23, %v984_v55  ;;  %v767_v23 = vld [vmem:[%s1110_s4 + $0xa0] sm:$0xff] }
 0x3a6   :  { %601 = vmatpush.msrb.mxu1 %v767_v23 }
 0x3a7   :  { %v523_v50 = vmax.f32 %v496_v47, 0.0 }
 0x3ac   :  { %v497_v44 = vpop.f32.mrf.mxu3 }
 0x3ad   :  { %v498_v39 = vadd.f32 %v497_v44, %v984_v55  ;;  %v476_v44 = vadd.f32 %v975_v19, %v984_v55  ;;  %v555_v19 = vld [vmem:[%s1110_s4 + $0x8] sm:$0xff] }
 0x3af   :  { %v524_v48 = vmax.f32 %v498_v39, 0.0 }
 0x3b4   :  { %v500_v24 = vpop.f32.mrf.mxu3 }
 0x3b5   :  { %v501_v37 = vadd.f32 %v500_v24, %v984_v55  ;;  %v516_v24 = vmax.f32 %v478_v41, 0.0 }
 0x3b7   :  { %v525_v45 = vmax.f32 %v501_v37, 0.0 }
 0x3bc   :  { %v502_v46 = vpop.f32.mrf.mxu3 }
 0x3bd   :  { %v503_v35 = vadd.f32 %v502_v46, %v984_v55  ;;  %v766_v46 = vld [vmem:[%s1110_s4 + $0x98] sm:$0xff] }
 0x3be   :  { %602 = vmatpush.msrb.mxu1 %v766_v46 }
 0x3bf   :  { %v526_v38 = vmax.f32 %v503_v35, 0.0 }
 0x3c4   :  { %v505_v25 = vpop.f32.mrf.mxu3 }
 0x3c5   :  { %v506_v33 = vadd.f32 %v505_v25, %v984_v55  ;;  %v556_v25 = vld [vmem:[%s1110_s4 + $0x10] sm:$0xff] }
 0x3c6   :  { %623 = vmatpush.msrb.mxu2 %v556_v25 }
 0x3c7   :  { %v527_v36 = vmax.f32 %v506_v33, 0.0 }
 0x3c8   :  { %624 = vmatpush.msrb.mxu2 %v555_v19 }
 0x3cc   :  { %v507_v51 = vpop.f32.mrf.mxu3 }
 0x3cd   :  { %v508_v31 = vadd.f32 %v507_v51, %v984_v55  ;;  %v765_v51 = vld [vmem:[%s1110_s4 + $0x90] sm:$0xff] }
 0x3ce   :  { %603 = vmatpush.msrb.mxu1 %v765_v51 }
 0x3cf   :  { %v528_v34 = vmax.f32 %v508_v31, 0.0 }
 0x3d4   :  { %v510_v26 = vpop.f32.mrf.mxu3 }
 0x3d5   :  { %v511_v29 = vadd.f32 %v510_v26, %v984_v55  ;;  %v515_v26 = vmax.f32 %v476_v44, 0.0 }
 0x3d7   :  { %v529_v32 = vmax.f32 %v511_v29, 0.0  ;;  %v763_v29 = vld [vmem:[%s1110_s4 + $0x80] sm:$0xff] }
 0x3dc   :  { %v512_v27 = vpop.f32.mrf.mxu3 }
 0x3dd   :  { %v513_v28 = vadd.f32 %v512_v27, %v984_v55  ;;  %v764_v55 = vld [vmem:[%s1110_s4 + $0x88] sm:$0xff]  ;;  %v532_v27 = vrot.slane %v964_v56, 2 }
 0x3de   :  { %604 = vmatpush.msrb.mxu1 %v764_v55 }
 0x3df   :  { %v530_v30 = vmax.f32 %v513_v28, 0.0  ;;  %v554_v28 = vld [vmem:[%s1110_s4] sm:$0xff] }
 0x3e0   :  { %625 = vmatpush.msrb.mxu2 %v554_v28  ;;  %605 = vmatpush.msrb.mxu1 %v763_v29 }
 0x3e1   :  { %534 = vmatpush.xpose.msrb.mxu0 %v530_v30 }
 0x3e5   :  { %535 = vmatpush.xpose.msrb.mxu0 %v529_v32 }
 0x3e9   :  { %536 = vmatpush.xpose.msrb.mxu0 %v528_v34 }
 0x3ed   :  { %537 = vmatpush.xpose.msrb.mxu0 %v527_v36 }
 0x3f1   :  { %538 = vmatpush.xpose.msrb.mxu0 %v526_v38 }
 0x3f5   :  { %539 = vmatpush.xpose.msrb.mxu0 %v525_v45 }
 0x3f9   :  { %540 = vmatpush.xpose.msrb.mxu0 %v524_v48 }
 0x3fd   :  { %541 = vmatpush.xpose.msrb.mxu0 %v523_v50 }
 0x401   :  { %542 = vmatpush.xpose.msrb.mxu0 %v522_v53 }
 0x405   :  { %543 = vmatpush.xpose.msrb.mxu0 %v521_v63 }
 0x409   :  { %544 = vmatpush.xpose.msrb.mxu0 %v520_v5 }
 0x40d   :  { %545 = vmatpush.xpose.msrb.mxu0 %v519_v58 }
 0x411   :  { %546 = vmatpush.xpose.msrb.mxu0 %v518_v16 }
 0x415   :  { %547 = vmatpush.xpose.msrb.mxu0 %v517_v42 }
 0x419   :  { %548 = vmatpush.xpose.msrb.mxu0 %v516_v24 }
 0x41d   :  { %549 = vmatpush.xpose.msrb.mxu0 %v515_v26 }
 0x420   :  { %550 = vmatmul.f32.vlgmr.msrb.gmra.mxu0 %v532_v27 }
 0x49d   :  { %v551_v30 = vpop.f32.mrf.mxu0 }
 0x49e   :  { %v588_v31 = vrot.slane %v551_v30, 1  ;;  %626 = vmatmul.f32.vlgmr.msrb.gmra.mxu2 %v551_v30 }
 0x4a0   :  { %606 = vmatmul.f32.vlgmr.msrb.gmra.mxu1 %v588_v31 }
 0x51d   :  { %v607_v56 = vpop.f32.mrf.mxu1 }
 0x521   :  { %v627_v32 = vpop.f32.mrf.mxu2 }
 0x522   :  { %v628_v33 = vadd.f32 %v627_v32, %v607_v56 }
 0x524   :  { %630 = vst [vmem:[%s1111_s5] sm:$0x1] %v628_v33 }

</bundles_post_ra>
